<compile_context>
chip_gen: v5e
topology: v5e:2x2
jax: 0.10.0
libtpu: 0.0.40
codegen_flags: <defaults>
</compile_context>

<pallas_src>
import jax
import jax.numpy as jnp
from jax.experimental import pallas as pl
from jax.experimental.pallas import tpu as pltpu

LN_EPS = 1e-5


def _round_up(a, b):
    return (a + b - 1) // b * b


def patch_embed_2d(x, conv_w, conv_b, pos, ln_gamma, ln_beta, patch_size):
    """x: (B, C, H, W) float32 NCHW.  Returns (B, L, E) float32."""
    B, C, H, W = x.shape
    ph, pw = patch_size
    Ht, Wt = H // ph, W // pw
    L = Ht * Wt
    E = conv_w.shape[0]
    K = C * ph * pw

    # Lane-dense padded feature dims (multiples of 128).
    Kp = _round_up(K, 128)
    Ep = _round_up(E, 128)

    # Token tile: multiple of 8, capped at 512 rows (HBM roofline needs >=512
    # row blocks; per-grid-step overhead ~0.35us).  Keep >= 2 grid steps so
    # both v7x TensorCores get work under dimension_semantics=("parallel",).
    TL = min(512, _round_up(L, 8))
    if B * pl.cdiv(L, TL) < 2 and L > 8:
        TL = _round_up(pl.cdiv(L, 2), 8)
    Lp = _round_up(L, TL)
    tiles_per_img = Lp // TL
    rows = B * Lp
    grid = (rows // TL,)

    # Non-overlapping-strided Conv2d == patch extraction + matmul.
    # Cast to bf16 BEFORE the rearrange to halve its HBM traffic; the producer
    # is exposed to input fusion via allow_input_fusion below.
    # TODO(synk): read NCHW row-bands directly in-kernel (BlockSpec over H +
    # in-VMEM repack) to avoid materializing the (B*Lp, Kp) slab in HBM.
    xb = x.astype(jnp.bfloat16)
    patches = (
        xb.reshape(B, C, Ht, ph, Wt, pw)
        .transpose(0, 2, 4, 1, 3, 5)
        .reshape(B, L, K)
    )
    patches = jnp.pad(patches, ((0, 0), (0, Lp - L), (0, Kp - K)))
    patches = patches.reshape(rows, Kp)                                  # (B*Lp, Kp) bf16

    # Conv weight -> (K, E) matmul operand, zero-padded, bf16.
    w_mat = jnp.pad(
        conv_w.reshape(E, K).T.astype(jnp.float32), ((0, Kp - K), (0, Ep - E))
    ).astype(jnp.bfloat16)                                               # (Kp, Ep)

    # Fold conv bias into the positional tensor (one fewer operand/DMA).
    pos_b = (pos.reshape(L, E).astype(jnp.float32)
             + conv_b.reshape(1, E).astype(jnp.float32))
    pos_b = jnp.pad(pos_b, ((0, Lp - L), (0, Ep - E)))                   # (Lp, Ep) f32

    gamma = jnp.pad(ln_gamma.reshape(1, E).astype(jnp.float32), ((0, 0), (0, Ep - E)))
    beta = jnp.pad(ln_beta.reshape(1, E).astype(jnp.float32), ((0, 0), (0, Ep - E)))

    inv_e = 1.0 / float(E)

    # Keep pos fully VMEM-resident (HBM read once, not once per image) unless
    # its double-buffered footprint would be excessive.
    pos_resident = (2 * Lp * Ep * 4) <= (8 << 20)

    def kernel(p_ref, w_ref, pos_ref, g_ref, b_ref, o_ref):
        # p_ref: (TL, Kp) bf16   w_ref: (Kp, Ep) bf16
        # pos_ref: (Lp, Ep) f32 (resident) or (TL, Ep) f32 (streamed)
        # g_ref/b_ref: (1, Ep) f32                      o_ref: (TL, Ep) f32
        y = jnp.dot(p_ref[...], w_ref[...], preferred_element_type=jnp.float32)
        if pos_resident and tiles_per_img > 1:
            t = pl.program_id(0) % tiles_per_img
            r0 = pl.multiple_of(t * TL, TL)
            y = y + pos_ref[pl.ds(r0, TL), :]
        else:
            y = y + pos_ref[...]
        # LayerNorm over the TRUE E columns.  Padded columns of y are exactly
        # zero (zero-padded weight / pos), so the sums over Ep equal the sums
        # over E; var = E[y^2] - mean^2 needs no mask / iota.
        mean = jnp.sum(y, axis=-1, keepdims=True) * inv_e
        ex2 = jnp.sum(y * y, axis=-1, keepdims=True) * inv_e
        var = ex2 - mean * mean
        y_hat = (y - mean) * jax.lax.rsqrt(var + LN_EPS)
        o_ref[...] = (y_hat * g_ref[...] + b_ref[...]).astype(o_ref.dtype)

    if pos_resident:
        pos_spec = pl.BlockSpec((Lp, Ep), lambda i: (0, 0))              # resident
    else:
        pos_spec = pl.BlockSpec((TL, Ep), lambda i: (i % tiles_per_img, 0))

    # Footprint-derived VMEM budget: double-buffered tiles + resident operands
    # + headroom, capped comfortably under v7x's 64 MiB physical VMEM.
    buf = 2
    footprint = (
        buf * TL * Kp * 2                                   # patches tile (bf16)
        + buf * Kp * Ep * 2                                  # weight (bf16)
        + buf * (Lp if pos_resident else TL) * Ep * 4        # pos (+bias)
        + buf * 2 * Ep * 4                                   # gamma / beta
        + buf * TL * Ep * 4                                  # output tile
    )
    vmem_limit = min(max(2 * footprint + (4 << 20), 16 << 20), 60 << 20)

    flops = 2 * rows * Kp * Ep
    bytes_accessed = (rows * Kp * 2 + Kp * Ep * 2 + Lp * Ep * 4
                      + 2 * Ep * 4 + rows * Ep * 4)

    out = pl.pallas_call(
        kernel,
        out_shape=jax.ShapeDtypeStruct((rows, Ep), jnp.float32),
        grid_spec=pltpu.PrefetchScalarGridSpec(
            num_scalar_prefetch=0,
            grid=grid,
            in_specs=[
                pl.BlockSpec((TL, Kp), lambda i: (i, 0)),    # patches tile
                pl.BlockSpec((Kp, Ep), lambda i: (0, 0)),    # weight (resident)
                pos_spec,                                    # pos (+conv bias)
                pl.BlockSpec((1, Ep), lambda i: (0, 0)),     # LN gamma
                pl.BlockSpec((1, Ep), lambda i: (0, 0)),     # LN beta
            ],
            out_specs=pl.BlockSpec((TL, Ep), lambda i: (i, 0)),
        ),
        compiler_params=pltpu.CompilerParams(
            dimension_semantics=("parallel",),
            vmem_limit_bytes=vmem_limit,
            allow_input_fusion=[True, False, False, False, False],
        ),
        cost_estimate=pl.CostEstimate(
            flops=flops, transcendentals=rows, bytes_accessed=bytes_accessed),
    )(patches, w_mat, pos_b, gamma, beta)

    # When E % 128 == 0 and TL | L (common ViT shapes) this is a no-op.
    return out.reshape(B, Lp, Ep)[:, :L, :E]


def relative_factorized_position(dims, w1, b1, w2, b2):
    """Normalized [-1, 1] coordinate grid -> 2-layer MLP -> (L, E).

    # TODO(synk): exact RelativeFactorizedPosition MLP internals (hidden width /
    # activation) are not in the provided snippet; approximated as
    # Linear(2, E) -> GELU -> Linear(E, E) on a [-1, 1] factorized grid.
    """
    Ht, Wt = dims
    h = jnp.linspace(-1.0, 1.0, Ht, dtype=jnp.float32)
    w = jnp.linspace(-1.0, 1.0, Wt, dtype=jnp.float32)
    gh, gw = jnp.meshgrid(h, w, indexing="ij")
    grid = jnp.stack([gh, gw], axis=-1).reshape(-1, 2)          # (L, 2)
    hid = jax.nn.gelu(grid @ w1 + b1)
    return hid @ w2 + b2                                        # (L, E)


if __name__ == "__main__":
    # Small shapes consistent with the module's forward.
    B, C_in, H, W = 2, 4, 16, 16
    patch = (4, 4)
    E = 32
    Ht, Wt = H // patch[0], W // patch[1]
    L = Ht * Wt
    K = C_in * patch[0] * patch[1]

    key = jax.random.PRNGKey(0)
    kx, kw, kb, kp1, kp2, kb1, kb2 = jax.random.split(key, 7)

    x = jax.random.normal(kx, (B, C_in, H, W), dtype=jnp.float32)

    # Conv2d(in_channels=C_in, embed_dim=E, kernel=patch, stride=patch) params.
    conv_w = jax.random.normal(kw, (E, C_in, patch[0], patch[1]), dtype=jnp.float32) * 0.05
    conv_b = jax.random.normal(kb, (E,), dtype=jnp.float32) * 0.05

    # RelativeFactorizedPosition(2, E) MLP params (deterministic synthetic init).
    pos_w1 = jax.random.normal(kp1, (2, E), dtype=jnp.float32) * 0.5
    pos_b1 = jax.random.normal(kb1, (E,), dtype=jnp.float32) * 0.05
    pos_w2 = jax.random.normal(kp2, (E, E), dtype=jnp.float32) * 0.1
    pos_b2 = jax.random.normal(kb2, (E,), dtype=jnp.float32) * 0.05

    # LayerNorm(E) affine params.
    ln_gamma = jnp.ones((E,), dtype=jnp.float32)
    ln_beta = jnp.zeros((E,), dtype=jnp.float32)

    pos = relative_factorized_position((Ht, Wt), pos_w1, pos_b1, pos_w2, pos_b2)  # (L, E)

    # Jit the whole wrapper so XLA sees the patch-extraction producer and the
    # post-kernel slice together with the pallas_call (enables input fusion).
    patch_embed_jit = jax.jit(patch_embed_2d, static_argnames=("patch_size",))
    out = patch_embed_jit(x, conv_w, conv_b, pos, ln_gamma, ln_beta, patch_size=patch)
    out = jax.block_until_ready(out)

    # Reference in plain JAX, using the same bf16-rounded matmul operands with
    # f32 accumulation (mirrors the kernel's MXU numerics / torch 'high'
    # reduced-precision f32 matmul), then pos + LayerNorm in f32.
    patches_ref = (
        x.reshape(B, C_in, Ht, patch[0], Wt, patch[1])
        .transpose(0, 2, 4, 1, 3, 5)
        .reshape(B, L, K)
    )
    p_bf = patches_ref.astype(jnp.bfloat16).astype(jnp.float32)
    w_bf = conv_w.reshape(E, K).T.astype(jnp.bfloat16).astype(jnp.float32)
    y_ref = p_bf @ w_bf + conv_b + pos[None]
    mu = y_ref.mean(-1, keepdims=True)
    var = ((y_ref - mu) ** 2).mean(-1, keepdims=True)
    ref = (y_ref - mu) / jnp.sqrt(var + LN_EPS) * ln_gamma + ln_beta

    assert out.shape == (B, L, E)
    assert jnp.allclose(out, ref, atol=1e-3, rtol=1e-3), float(jnp.abs(out - ref).max())
    print("KERNEL_OK")
</pallas_src>

<mosaic_0001>
module attributes {stable_mosaic.version = 11 : i64} {
  func.func @kernel(%arg0: i32, %arg1: memref<16x128xbf16, #tpu.memory_space<vmem>>, %arg2: memref<128x128xbf16, #tpu.memory_space<vmem>>, %arg3: memref<16x128xf32, #tpu.memory_space<vmem>>, %arg4: memref<1x128xf32, #tpu.memory_space<vmem>>, %arg5: memref<1x128xf32, #tpu.memory_space<vmem>>, %arg6: memref<16x128xf32, #tpu.memory_space<vmem>>) attributes {dimension_semantics = [#tpu.dimension_semantics<parallel>], iteration_bounds = array<i64: 2>, scalar_prefetch = 0 : i64, scratch_operands = 0 : i64, tpu.core_type = #tpu.core_type<tc>, window_params = [{transform_indices = @transform_0, window_bounds = array<i64: 16, 128>}, {pipeline_mode = #tpu.pipeline_mode<synchronous>, transform_indices = @transform_1, window_bounds = array<i64: 128, 128>}, {pipeline_mode = #tpu.pipeline_mode<synchronous>, transform_indices = @transform_2, window_bounds = array<i64: 16, 128>}, {pipeline_mode = #tpu.pipeline_mode<synchronous>, transform_indices = @transform_3, window_bounds = array<i64: 1, 128>}, {pipeline_mode = #tpu.pipeline_mode<synchronous>, transform_indices = @transform_4, window_bounds = array<i64: 1, 128>}, {transform_indices = @transform_5, window_bounds = array<i64: 16, 128>}]} {
    %c0 = arith.constant 0 : index
    %c0_0 = arith.constant 0 : index
    %0 = vector.load %arg1[%c0, %c0_0] : memref<16x128xbf16, #tpu.memory_space<vmem>>, vector<16x128xbf16>
    %c0_1 = arith.constant 0 : index
    %c0_2 = arith.constant 0 : index
    %1 = vector.load %arg2[%c0_1, %c0_2] : memref<128x128xbf16, #tpu.memory_space<vmem>>, vector<128x128xbf16>
    %cst = arith.constant dense<0.000000e+00> : vector<16x128xf32>
    %2 = tpu.matmul %0, %1, %cst {dimension_numbers = #tpu.dot_dimension_numbers<[1], [0], [0], [1], [0, 0, 1, 1], [], []>} : vector<16x128xbf16>, vector<128x128xbf16>, vector<16x128xf32> -> vector<16x128xf32>
    %c0_3 = arith.constant 0 : index
    %c0_4 = arith.constant 0 : index
    %3 = vector.load %arg3[%c0_3, %c0_4] : memref<16x128xf32, #tpu.memory_space<vmem>>, vector<16x128xf32>
    %4 = arith.addf %2, %3 : vector<16x128xf32>
    %cst_5 = arith.constant dense<0.000000e+00> : vector<16xf32>
    %5 = vector.multi_reduction <add>, %4, %cst_5 [1] : vector<16x128xf32> to vector<16xf32>
    %6 = vector.shape_cast %5 : vector<16xf32> to vector<16x1xf32>
    %cst_6 = arith.constant 3.125000e-02 : f32
    %7 = vector.broadcast %cst_6 : f32 to vector<16x1xf32>
    %8 = arith.mulf %6, %7 : vector<16x1xf32>
    %9 = arith.mulf %4, %4 : vector<16x128xf32>
    %cst_7 = arith.constant dense<0.000000e+00> : vector<16xf32>
    %10 = vector.multi_reduction <add>, %9, %cst_7 [1] : vector<16x128xf32> to vector<16xf32>
    %11 = vector.shape_cast %10 : vector<16xf32> to vector<16x1xf32>
    %cst_8 = arith.constant 3.125000e-02 : f32
    %12 = vector.broadcast %cst_8 : f32 to vector<16x1xf32>
    %13 = arith.mulf %11, %12 : vector<16x1xf32>
    %14 = arith.mulf %8, %8 : vector<16x1xf32>
    %15 = arith.subf %13, %14 : vector<16x1xf32>
    %16 = vector.broadcast %8 : vector<16x1xf32> to vector<16x128xf32>
    %17 = arith.subf %4, %16 : vector<16x128xf32>
    %cst_9 = arith.constant 9.99999974E-6 : f32
    %18 = vector.broadcast %cst_9 : f32 to vector<16x1xf32>
    %19 = arith.addf %15, %18 : vector<16x1xf32>
    %20 = math.rsqrt %19 : vector<16x1xf32>
    %21 = vector.broadcast %20 : vector<16x1xf32> to vector<16x128xf32>
    %22 = arith.mulf %17, %21 : vector<16x128xf32>
    %c0_10 = arith.constant 0 : index
    %c0_11 = arith.constant 0 : index
    %23 = vector.load %arg4[%c0_10, %c0_11] : memref<1x128xf32, #tpu.memory_space<vmem>>, vector<1x128xf32>
    %24 = vector.broadcast %23 : vector<1x128xf32> to vector<16x128xf32>
    %25 = arith.mulf %22, %24 : vector<16x128xf32>
    %c0_12 = arith.constant 0 : index
    %c0_13 = arith.constant 0 : index
    %26 = vector.load %arg5[%c0_12, %c0_13] : memref<1x128xf32, #tpu.memory_space<vmem>>, vector<1x128xf32>
    %27 = vector.broadcast %26 : vector<1x128xf32> to vector<16x128xf32>
    %28 = arith.addf %25, %27 : vector<16x128xf32>
    %c0_14 = arith.constant 0 : index
    %c0_15 = arith.constant 0 : index
    %29 = vector.load %arg6[%c0_14, %c0_15] : memref<16x128xf32, #tpu.memory_space<vmem>>, vector<16x128xf32>
    tpu.vector_store %arg6[%c0_14, %c0_15], %28 {strides = array<i32>} : memref<16x128xf32, #tpu.memory_space<vmem>>, vector<16x128xf32>,
    return
  }
  func.func @transform_0(%arg0: i32) -> (i32, i32) {
    %c0_i32 = arith.constant 0 : i32
    %c0_i32_0 = arith.constant 0 : i32
    return %arg0, %c0_i32 : i32, i32
  }
  func.func @transform_1(%arg0: i32) -> (i32, i32) {
    %c0_i32 = arith.constant 0 : i32
    %c0_i32_0 = arith.constant 0 : i32
    %c0_i32_1 = arith.constant 0 : i32
    return %c0_i32, %c0_i32_0 : i32, i32
  }
  func.func @transform_2(%arg0: i32) -> (i32, i32) {
    %c0_i32 = arith.constant 0 : i32
    %c0_i32_0 = arith.constant 0 : i32
    %c0_i32_1 = arith.constant 0 : i32
    return %c0_i32, %c0_i32_0 : i32, i32
  }
  func.func @transform_3(%arg0: i32) -> (i32, i32) {
    %c0_i32 = arith.constant 0 : i32
    %c0_i32_0 = arith.constant 0 : i32
    %c0_i32_1 = arith.constant 0 : i32
    return %c0_i32, %c0_i32_0 : i32, i32
  }
  func.func @transform_4(%arg0: i32) -> (i32, i32) {
    %c0_i32 = arith.constant 0 : i32
    %c0_i32_0 = arith.constant 0 : i32
    %c0_i32_1 = arith.constant 0 : i32
    return %c0_i32, %c0_i32_0 : i32, i32
  }
  func.func @transform_5(%arg0: i32) -> (i32, i32) {
    %c0_i32 = arith.constant 0 : i32
    %c0_i32_0 = arith.constant 0 : i32
    return %arg0, %c0_i32 : i32, i32
  }
}

</mosaic_0001>

<bundles_post_ra>
// kernel: patch_embed_2d.1
= control target key start
LH: loop header
LB: loop body
LE: loop exit
PB: predicated region body
PF: predicated region fallthrough
CT: control target
= control target key end

     0   :  { %10 = vsyncpa [#allocation3], 0  ;;  %s775_s0 = inlined_call_operand.vmem [shape: bf16[32,128], index: 0, kind: input, shape index: {}]   ;;  %s776_s1 = inlined_call_operand.vmem [shape: bf16[128,128], index: 1, kind: input, shape index: {}]   ;;  %s777_s2 = inlined_call_operand.vmem [shape: f32[16,128], index: 2, kind: input, shape index: {}]   ;;  %s778_s3 = inlined_call_operand.vmem [shape: f32[1,128], index: 3, kind: input, shape index: {}]   ;;  %s779_s4 = inlined_call_operand.vmem [shape: f32[1,128], index: 4, kind: input, shape index: {}]   ;;  %s780_s5 = inlined_call_operand.hbm [shape: f32[32,128], index: 5, kind: output, shape index: {}]  }
   0x1   :  { %12 = vsyncpa [#allocation3 + $0x1], 0  ;;  %s651_s18 = smov 0   ;;  %s653_s19 = smov 0  }
   0x2   :  { %s655_s20 = smov 0   ;;  %s657_s21 = smov 0  }
   0x3 LB: > { %s672_s22 = sadd.s32 4294967295, %s617_s21   ;;  %s450_s23 = sadd.s32 4294967294, %s617_s21   ;;  %s617_s21 = sphi %s657_s21, %s786_s21   ;;  %s613_s20 = sphi %s655_s20, %s785_s20   ;;  %s609_s19 = sphi %s653_s19, %s784_s19   ;;  %s605_s18 = sphi %s651_s18, %s783_s18  }
   0x4   : > { %s676_s24 = sadd.s32 1, %s617_s21   ;;  %s135_s25 = sadd.s32 1, %s613_s20 }
   0x5   : > { %s132_s26 = ssub.s32 %s617_s21, %s676_s24  ;;  %p145_p0 = scmp.ne.s32.totalorder %s613_s20, %s609_s19 }
   0x6   : > { %p133_p1 = scmp.eq.s32.totalorder %s132_s26, 0  ;;  %p146_p2 = scmp.eq.s32.totalorder %s672_s22, 1 }
   0x7   : > { %p151_p3 = scmp.ne.s32.totalorder %s609_s19, %s605_s18  ;;  %p152_p4 = scmp.eq.s32.totalorder %s450_s23, 1 }
   0x8   : > { %s687_s27 = scalar_select %p133_p1, %s613_s20, %s135_s25  }
   0x9   : > { %p689_p5 = por %p146_p2, %p145_p0  ;;  %p693_p6 = por %p152_p4, %p151_p3 }
   0xa   : > { %p453_p7 = scmp.ge.s32.totalorder %s617_s21, 1  ;;  %p191_p8 = scmp.lt.s32.totalorder %s617_s21, 3 }
   0xc   : > { %p192_p9 = pnand %p453_p7, %p191_p8 }
   0xd   : > { %s455_s13 = sshll.u32 (!%p192_p9), %s672_s22, 1  ;;  %s216_s14 = sand.u32 (!%p192_p9), 1, %s609_s19  }
   0xe   : > { %195 = sbr.rel (%p192_p9) target bundleno = 339 (0x153), region = 40  ;;  %p220_p10 = scmp.lt.s32.totalorder (!%p192_p9), %s455_s13, 3 }
   0xf   : > { %s454_s17 = sshll.u32 (!%p192_p9), %s216_s14, 4  ;;  %s575_s16 = scalar_lea.hbm (!%p192_p9), %s780_s5, 32 }
  0x10   : > { %s218_s8 = scalar_lea.vmem (!%p192_p9), [#allocation2], %s454_s17 }
  0x13   : > { %v506_v0 = vld [vmem:[%s776_s1 + $0x38] sm:$0xff]  ;;  %v505_v1 = vld [vmem:[%s776_s1 + $0x30] sm:$0xff]  ;;  %v504_v2 = vld [vmem:[%s776_s1 + $0x28] sm:$0xff]  ;;  %s788_s13 = smov (!%p220_p10, %s455_s13), 3 }
  0x14   : > { %300 = vmatpush.bf16.msra.mxu0 %v506_v0  ;;  %v503_v3 = vld [vmem:[%s776_s1 + $0x20] sm:$0xff]  ;;  %v502_v4 = vld [vmem:[%s776_s1 + $0x18] sm:$0xff]  ;;  %v501_v5 = vld [vmem:[%s776_s1 + $0x10] sm:$0xff]  ;;  %s456_s26 = sshll.u32 %s788_s13, 2 }
  0x15   : > { %v500_v6 = vld [vmem:[%s776_s1 + $0x8] sm:$0xff]  ;;  %v499_v7 = vld [vmem:[%s776_s1] sm:$0xff]  ;;  %s223_s9 = scalar_lea.vmem %s775_s0, %s456_s26  ;;  %s507_s26 = sshll.u32 %s672_s22, 4 }
  0x16   : > { %v498_v8 = vld [vmem:[%s223_s9] sm:$0xff]  ;;  %v245_v13 = vld [vmem:[%s777_s2 + $0x8] sm:$0xff]  ;;  %s384_s7 = scalar_lea.hbm %s780_s5, %s507_s26  ;;  %s385_s9 = sshll.u32 %s218_s8, 4  ;;  %s386_s9 = int_to_ptr.vmem [resolvable:$true] %s385_s9 }
  0x17   : > { %v244_v9 = vld [vmem:[%s777_s2] sm:$0xff]  ;;  %s387_s10 = sshll.u32 %s384_s7, 4  ;;  %s373_s22 = scalar_lea.sflag [#allocation3], %s216_s14  ;;  %s388_s10 = int_to_ptr.hbm [resolvable:$true] %s387_s10 }
  0x18   : > { %301 = vmatpush.bf16.msra.mxu0 %v505_v1  ;;  %v549_v40 = vld [vmem:[%s778_s3] ss:$0 sm:$0xff]  ;;  %s569_s11 = sshra.s32 %s388_s10, 4  ;;  %s570_s11 = int_to_ptr.hbm [resolvable:$true] %s569_s11 }
  0x19   : > { %v550_v44 = vld [vmem:[%s779_s4] ss:$0 sm:$0xff]  ;;  %s571_s12 = scalar_lea.hbm %s570_s11, 16  ;;  %p576_p0 = scmp.lt.s32.totalorder %s570_s11, %s780_s5 }
  0x1a   : > { %p572_p11 = scmp.ne.s32.totalorder %s570_s11, %s571_s12  ;;  %p577_p1 = scmp.lt.s32.totalorder %s575_s16, %s571_s12 }
  0x1c   : > { %302 = vmatpush.bf16.msra.mxu0 %v504_v2  ;;  %p573_p12 = pnand %p572_p11, %p689_p5  ;;  %p578_p2 = por %p577_p1, %p576_p0 }
  0x1e   : > { %p574_p13 = pneg %p573_p12 }
  0x20   : > { %303 = vmatpush.bf16.msra.mxu0 %v503_v3  ;;  %p579_p3 = pnand %p578_p2, %p574_p13 }
  0x24   : > { %304 = vmatpush.bf16.msra.mxu0 %v502_v4 }
  0x28   : > { %305 = vmatpush.bf16.msra.mxu0 %v501_v5 }
  0x2c   : > { %306 = vmatpush.bf16.msra.mxu0 %v500_v6 }
  0x30   : > { %307 = vmatpush.bf16.msra.mxu0 %v499_v7 }
  0x33   : > { %308 = vmatmul.bf16.vlgmr.msra.gmra.mxu0 %v498_v8 }
  0xb0   : > { %v309_v10 = vpop.f32.mrf.mxu0 }
  0xb1   : > { %v310_v11 = vadd.f32 %v309_v10, %v244_v9 }
  0xb3   : > { %314 = vadd.xlane.f32.xlu0 %v310_v11  ;;  %v320_v12 = vmul.f32 %v310_v11, %v310_v11 }
  0xb5   : > { %322 = vadd.xlane.f32.xlu1 %v320_v12 }
  0xb8   : > { %v311_v14 = vpop.f32.mrf.mxu0 }
  0xb9   : > { %v312_v15 = vadd.f32 %v311_v14, %v245_v13 }
  0xbb   : > { %316 = vadd.xlane.f32.xlu0 %v312_v15  ;;  %v321_v16 = vmul.f32 %v312_v15, %v312_v15 }
  0xbd   : > { %324 = vadd.xlane.f32.xlu1 %v321_v16 }
 0x126   : > { %v315_v17 = vpop.xlane.xlu0 %314 }
 0x127   : > { %v318_v18 = vmul.f32 0.03125, %v315_v17 }
 0x128   : > { %v323_v19 = vpop.xlane.xlu1 %322 }
 0x129   : > { %v328_v20 = vmul.f32 %v318_v18, %v318_v18  ;;  %v326_v21 = vmul.f32 0.03125, %v323_v19  ;;  %v332_v39 = vsub.f32 %v310_v11, %v318_v18 }
 0x12b   : > { %v330_v22 = vsub.f32 %v326_v21, %v328_v20 }
 0x12d   : > { %v334_v23 = vadd.f32 1e-05, %v330_v22 }
 0x12e   : > { %v317_v24 = vpop.xlane.xlu0 %316 }
 0x12f   : > { %551 = vrsqrt.f32 %v334_v23  ;;  %v319_v25 = vmul.f32 0.03125, %v317_v24  ;;  %vm342_vm1 = vweird.f32 %v334_v23 }
 0x130   : > { %v325_v26 = vpop.xlane.xlu1 %324 }
 0x131   : > { %v329_v27 = vmul.f32 %v319_v25, %v319_v25  ;;  %v327_v28 = vmul.f32 0.03125, %v325_v26  ;;  %v333_v50 = vsub.f32 %v312_v15, %v319_v25 }
 0x133   : > { %v331_v29 = vsub.f32 %v327_v28, %v329_v27 }
 0x135   : > { %v552_v30 = vpop.eup %551  ;;  %v335_v31 = vadd.f32 1e-05, %v331_v29 }
 0x136   : > { %v337_v32 = vmul.f32 %v552_v30, %v334_v23  ;;  %vm343_vm0 = vweird.f32 %v552_v30 }
 0x137   : > { %553 = vrsqrt.f32 %v335_v31  ;;  %vm344_vm2 = vmor %vm342_vm1, %vm343_vm0  ;;  %vm352_vm4 = vweird.f32 %v335_v31 }
 0x138   : > { %v338_v33 = vmul.f32 %v552_v30, %v337_v32 }
 0x13a   : > { %v339_v34 = vmul.f32 0.5, %v338_v33 }
 0x13c   : > { %v340_v35 = vsub.f32 1.5, %v339_v34 }
 0x13d   : > { %v554_v36 = vpop.eup %553 }
 0x13e   : > { %v341_v37 = vmul.f32 %v552_v30, %v340_v35  ;;  %v347_v38 = vmul.f32 %v554_v36, %v335_v31  ;;  %vm353_vm3 = vweird.f32 %v554_v36 }
 0x13f   : > { %vm354_vm5 = vmor %vm352_vm4, %vm353_vm3 }
 0x140   : > { %v345_v41 = vsel %vm344_vm2, %v552_v30, %v341_v37  ;;  %v348_v42 = vmul.f32 %v554_v36, %v347_v38 }
 0x141   : > { %v356_v43 = vmul.f32 %v345_v41, %v332_v39 }
 0x142   : > { %v349_v45 = vmul.f32 0.5, %v348_v42 }
 0x143   : > { %v362_v46 = vmul.f32 %v549_v40, %v356_v43 }
 0x144   : > { %v350_v47 = vsub.f32 1.5, %v349_v45 }
 0x145   : > { %v368_v48 = vadd.f32 %v550_v44, %v362_v46 }
 0x146   : > { %v351_v49 = vmul.f32 %v554_v36, %v350_v47 }
 0x147   : > { %370 = vst [vmem:[%s218_s8] sm:$0xff] %v368_v48 }
 0x148   : > { %v355_v51 = vsel %vm354_vm5, %v554_v36, %v351_v49 }
 0x149   : > { %v357_v52 = vmul.f32 %v355_v51, %v333_v50 }
 0x14b   : > { %v363_v53 = vmul.f32 %v549_v40, %v357_v52 }
 0x14d   : > { %v369_v54 = vadd.f32 %v550_v44, %v363_v53 }
 0x14f   : > { %371 = vst [vmem:[%s218_s8 + $0x8] sm:$0xff] %v369_v54 }
 0x150   : > { %582 = shalt.err (!%p579_p3)
}
 0x151   : > { %s619_s14 = smov 128   ;;  %s620_s25 = smov 8  }
 0x152   : > { %508 = dma.vmem_to_hbm [thread:$0]  (%p689_p5), %s386_s9, 256, %s388_s10, %s373_s22, %s619_s14, %s619_s14, %s620_s25  }
 0x153 PF: > { %p514_p4 = scmp.ge.s32.totalorder %s617_s21, 2  ;;  %s402_s26 = sand.u32 1, %s605_s18  }
 0x154   : > { %s403_s30 = scalar_lea.sflag [#allocation3], %s402_s26 }
 0x155   : > { %p511_p7 = pnand %p514_p4, %p693_p6 }
 0x157   : > { %p512_p8 = pneg %p511_p7 }
 0x159   : > { %600 = dma.done.wait (%p512_p8), %s403_s30, 256  }
 0x15a   : > { %602 = vsyncadd (%p512_p8), %s403_s30, 4294967040  ;;  %p15_p9 = scmp.ge.s32.totalorder %s676_s24, 4   ;;  %s783_s18 = smov %s609_s19 }
 0x15b   : > { %s784_s19 = smov %s613_s20  ;;  %s785_s20 = smov %s687_s27 }
 0x15c   : > { %s786_s21 = smov %s676_s24  ;;  %17 = sbr.rel (!%p15_p9) target bundleno = 3 (0x3), region = 75 }
 0x161   :  { %409 = vsyncpa [#allocation3], 1 }
 0x162   :  { %411 = vsyncpa [#allocation3 + $0x1], 1 }

</bundles_post_ra>
